<compile_context>
chip_gen: v6e
topology: v6e:2x2x1
jax: 0.10.0
libtpu: 0.0.40
codegen_flags: <defaults>
</compile_context>

<pallas_src>
import functools

import jax
import jax.numpy as jnp
from jax.experimental import pallas as pl
from jax.experimental.pallas import tpu as pltpu

_LANE = 128


def _round_up(n, m):
    return ((n + m - 1) // m) * m


def _fcn_kernel(*refs, num_layers, num_subtiles, compute_dtype):
    """Fused L-layer MLP forward for one batch tile, entirely in VMEM.

    refs = (x_ref, w_0 .. w_{L-1}, b_stack_ref, o_ref).  Matmul inputs are cast to
    the compute dtype (bf16) in-kernel, accumulation is f32 via
    preferred_element_type, bias add + ReLU are done in f32 (v5e VPU has no bf16
    datapath), then cast back down to feed the next MXU pass.
    """
    x_ref = refs[0]
    w_refs = refs[1:1 + num_layers]
    b_ref = refs[1 + num_layers]
    o_ref = refs[2 + num_layers]

    def chain(x_blk):
        h = x_blk.astype(compute_dtype)
        for li, w_ref in enumerate(w_refs):
            acc = jnp.dot(h, w_ref[...], preferred_element_type=jnp.float32)
            acc = acc + b_ref[li:li + 1, 0:w_ref.shape[1]]
            if li < num_layers - 1:
                h = jnp.maximum(acc, 0.0).astype(compute_dtype)
            else:
                h = acc
        return h

    rows = x_ref.shape[0]
    if num_subtiles == 1:
        o_ref[...] = chain(x_ref[...]).astype(o_ref.dtype)
    else:
        # Two (or more) independent sub-chains: the LLO scheduler overlaps one
        # chain's MXU pushes with the other's result drain (latency hiding on
        # v5e/v6e where the MXU result path is a FIFO).
        sub = rows // num_subtiles
        for s in range(num_subtiles):
            lo = s * sub
            o_ref[lo:lo + sub, :] = chain(x_ref[lo:lo + sub, :]).astype(o_ref.dtype)


def _pad_params(params, compute_dtype):
    """Zero-pad weights so in/out dims are lane (128) multiples; stack biases.

    Layer 0's input dim is left unpadded (x is fed to the kernel unpadded; Mosaic
    pads the K lane layout internally).  Each later layer's input dim is padded to
    match the previous layer's padded output.  Zero padding is numerically exact
    through Linear+ReLU: padded hidden units are relu(x @ 0 + 0) = 0 and padded
    weight rows contribute 0 downstream.
    """
    out_pads = [_round_up(w.shape[1], _LANE) for w, _ in params]
    max_out = max(out_pads)

    ws, b_rows = [], []
    prev_out_pad = params[0][0].shape[0]     # layer-0 K stays = input_dim
    for (w, b), out_pad in zip(params, out_pads):
        d_in, d_out = w.shape
        wp = jnp.pad(w, ((0, prev_out_pad - d_in), (0, out_pad - d_out)))
        ws.append(wp.astype(compute_dtype))
        b_rows.append(jnp.pad(b.reshape(-1).astype(jnp.float32), (0, max_out - d_out)))
        prev_out_pad = out_pad
    b_stack = jnp.stack(b_rows)              # (L, max_out_pad) f32, resident
    return ws, b_stack, out_pads[-1]


@functools.partial(
    jax.jit,
    static_argnames=("batch_tile", "compute_dtype", "num_subtiles", "out_dtype"))
def fcn_forward(x, params, *, batch_tile=512, compute_dtype=jnp.bfloat16,
                num_subtiles=None, out_dtype=jnp.float32):
    """x: (B, input_dim) or (B, ...) float32.
    params: list of (W (in, out), b (out,)) -> computes y = x @ W + b per layer,
    which equals torch nn.Linear(x) = x @ W.T + b with W stored transposed."""
    if x.ndim > 2:
        x = x.reshape(x.shape[0], -1)        # same as torch x.view(-1, prod(shape[1:]))
    B, D = x.shape
    num_layers = len(params)
    class_num = params[-1][0].shape[1]

    ws, b_stack, c_pad = _pad_params(params, compute_dtype)

    # --- batch tiling --------------------------------------------------------
    if B <= batch_tile:
        tile, grid_b, xp = B, 1, x           # single grid step, no batch padding
    else:
        tile = batch_tile
        b_pad = _round_up(B, tile)
        xp = x if b_pad == B else jnp.pad(x, ((0, b_pad - B), (0, 0)))
        grid_b = b_pad // tile

    # 2-way sub-tile interleave only where it helps (mid-size tiles on v5e/v6e).
    if num_subtiles is None:
        num_subtiles = 2 if (128 <= tile < 512 and tile % 16 == 0) else 1

    def resident(arr):
        # Full-array block with the same block index every step -> fetched once,
        # stays resident in VMEM across all grid steps.
        return pl.BlockSpec(arr.shape, lambda i: (0,) * arr.ndim)

    in_specs = ([pl.BlockSpec((tile, D), lambda i: (i, 0))]   # x: raw f32, row-tiled
                + [resident(w) for w in ws]
                + [resident(b_stack)])
    out_specs = pl.BlockSpec((tile, c_pad), lambda i: (i, 0))  # lane-dense (x128) store

    kernel = functools.partial(_fcn_kernel, num_layers=num_layers,
                               num_subtiles=num_subtiles, compute_dtype=compute_dtype)

    out_padded = pl.pallas_call(
        kernel,
        out_shape=jax.ShapeDtypeStruct((grid_b * tile, c_pad), out_dtype),
        grid=(grid_b,),
        in_specs=in_specs,
        out_specs=out_specs,
        compiler_params=pltpu.CompilerParams(
            dimension_semantics=("parallel",),   # megacore / v7x dual-TC sharding
            vmem_limit_bytes=32 * 1024 * 1024,   # plenty up to tile ~ 4k rows
        ),
    )(xp, *ws, b_stack)

    return out_padded[:B, :class_num]


def init_fcn_params(key, input_dim, hidden_dims, class_num):
    """Deterministic init matching nn.Linear's U(-1/sqrt(fan_in), +1/sqrt(fan_in)).
    Weights are stored (in, out) = torch weight transposed."""
    dims = [input_dim] + list(hidden_dims) + [class_num]
    params = []
    for d_in, d_out in zip(dims[:-1], dims[1:]):
        key, kw, kb = jax.random.split(key, 3)
        bound = 1.0 / jnp.sqrt(d_in)
        w = jax.random.uniform(kw, (d_in, d_out), jnp.float32, -bound, bound)
        b = jax.random.uniform(kb, (d_out,), jnp.float32, -bound, bound)
        params.append((w, b))
    return params


def fcn_reference(x, params, compute_dtype=jnp.bfloat16):
    """Plain-JAX reference with the same bf16-matmul / f32-accumulate recipe."""
    if x.ndim > 2:
        x = x.reshape(x.shape[0], -1)
    h = x.astype(compute_dtype)
    n = len(params)
    for i, (w, b) in enumerate(params):
        h = (jnp.dot(h, w.astype(compute_dtype), preferred_element_type=jnp.float32)
             + b.reshape(1, -1).astype(jnp.float32))
        if i < n - 1:
            h = jnp.maximum(h, 0.0).astype(compute_dtype)
    return h


if __name__ == "__main__":
    # Module defaults: FCN(input_dim=28*28, hidden_dims=[100, 100, 100], class_num=10).
    # Small demo: batch=16 NCHW-like images (B, 1, 28, 28), flattened like x.view(...).
    input_dim = 28 * 28
    hidden_dims = [100, 100, 100]
    class_num = 10
    batch = 16

    key = jax.random.PRNGKey(0)
    key, kx = jax.random.split(key)
    x_img = jax.random.normal(kx, (batch, 1, 28, 28), jnp.float32)

    params = init_fcn_params(key, input_dim, hidden_dims, class_num)

    out = fcn_forward(x_img, params)
    out = jax.block_until_ready(out)

    ref = fcn_reference(x_img, params)
    assert out.shape == (batch, class_num)
    assert jnp.allclose(out, ref, atol=5e-3, rtol=5e-3), "mismatch vs reference"

    print("KERNEL_OK")
</pallas_src>

<mosaic_0001>
module attributes {stable_mosaic.version = 11 : i64} {
  func.func @_fcn_kernel(%arg0: i32, %arg1: memref<16x784xf32, #tpu.memory_space<vmem>>, %arg2: memref<784x128xbf16, #tpu.memory_space<vmem>>, %arg3: memref<128x128xbf16, #tpu.memory_space<vmem>>, %arg4: memref<128x128xbf16, #tpu.memory_space<vmem>>, %arg5: memref<128x128xbf16, #tpu.memory_space<vmem>>, %arg6: memref<4x128xf32, #tpu.memory_space<vmem>>, %arg7: memref<16x128xf32, #tpu.memory_space<vmem>>) attributes {dimension_semantics = [#tpu.dimension_semantics<parallel>], iteration_bounds = array<i64: 1>, scalar_prefetch = 0 : i64, scratch_operands = 0 : i64, tpu.core_type = #tpu.core_type<tc>, window_params = [{transform_indices = @transform_0, window_bounds = array<i64: 16, 784>}, {pipeline_mode = #tpu.pipeline_mode<synchronous>, transform_indices = @transform_1, window_bounds = array<i64: 784, 128>}, {pipeline_mode = #tpu.pipeline_mode<synchronous>, transform_indices = @transform_2, window_bounds = array<i64: 128, 128>}, {pipeline_mode = #tpu.pipeline_mode<synchronous>, transform_indices = @transform_3, window_bounds = array<i64: 128, 128>}, {pipeline_mode = #tpu.pipeline_mode<synchronous>, transform_indices = @transform_4, window_bounds = array<i64: 128, 128>}, {pipeline_mode = #tpu.pipeline_mode<synchronous>, transform_indices = @transform_5, window_bounds = array<i64: 4, 128>}, {transform_indices = @transform_6, window_bounds = array<i64: 16, 128>}]} {
    %c0 = arith.constant 0 : index
    %c0_0 = arith.constant 0 : index
    %0 = vector.load %arg1[%c0, %c0_0] : memref<16x784xf32, #tpu.memory_space<vmem>>, vector<16x784xf32>
    %1 = arith.truncf %0 : vector<16x784xf32> to vector<16x784xbf16>
    %c0_1 = arith.constant 0 : index
    %c0_2 = arith.constant 0 : index
    %2 = vector.load %arg2[%c0_1, %c0_2] : memref<784x128xbf16, #tpu.memory_space<vmem>>, vector<784x128xbf16>
    %cst = arith.constant dense<0.000000e+00> : vector<16x128xf32>
    %3 = tpu.matmul %1, %2, %cst {dimension_numbers = #tpu.dot_dimension_numbers<[1], [0], [0], [1], [0, 0, 1, 1], [], []>} : vector<16x784xbf16>, vector<784x128xbf16>, vector<16x128xf32> -> vector<16x128xf32>
    %c0_3 = arith.constant 0 : index
    %c0_4 = arith.constant 0 : index
    %4 = vector.load %arg6[%c0_3, %c0_4] : memref<4x128xf32, #tpu.memory_space<vmem>>, vector<1x128xf32>
    %5 = vector.broadcast %4 : vector<1x128xf32> to vector<16x128xf32>
    %6 = arith.addf %3, %5 : vector<16x128xf32>
    %cst_5 = arith.constant 0.000000e+00 : f32
    %7 = vector.broadcast %cst_5 : f32 to vector<16x128xf32>
    %8 = arith.maximumf %6, %7 : vector<16x128xf32>
    %9 = arith.truncf %8 : vector<16x128xf32> to vector<16x128xbf16>
    %c0_6 = arith.constant 0 : index
    %c0_7 = arith.constant 0 : index
    %10 = vector.load %arg3[%c0_6, %c0_7] : memref<128x128xbf16, #tpu.memory_space<vmem>>, vector<128x128xbf16>
    %cst_8 = arith.constant dense<0.000000e+00> : vector<16x128xf32>
    %11 = tpu.matmul %9, %10, %cst_8 {dimension_numbers = #tpu.dot_dimension_numbers<[1], [0], [0], [1], [0, 0, 1, 1], [], []>} : vector<16x128xbf16>, vector<128x128xbf16>, vector<16x128xf32> -> vector<16x128xf32>
    %c1 = arith.constant 1 : index
    %c0_9 = arith.constant 0 : index
    %12 = vector.load %arg6[%c1, %c0_9] : memref<4x128xf32, #tpu.memory_space<vmem>>, vector<1x128xf32>
    %13 = vector.broadcast %12 : vector<1x128xf32> to vector<16x128xf32>
    %14 = arith.addf %11, %13 : vector<16x128xf32>
    %cst_10 = arith.constant 0.000000e+00 : f32
    %15 = vector.broadcast %cst_10 : f32 to vector<16x128xf32>
    %16 = arith.maximumf %14, %15 : vector<16x128xf32>
    %17 = arith.truncf %16 : vector<16x128xf32> to vector<16x128xbf16>
    %c0_11 = arith.constant 0 : index
    %c0_12 = arith.constant 0 : index
    %18 = vector.load %arg4[%c0_11, %c0_12] : memref<128x128xbf16, #tpu.memory_space<vmem>>, vector<128x128xbf16>
    %cst_13 = arith.constant dense<0.000000e+00> : vector<16x128xf32>
    %19 = tpu.matmul %17, %18, %cst_13 {dimension_numbers = #tpu.dot_dimension_numbers<[1], [0], [0], [1], [0, 0, 1, 1], [], []>} : vector<16x128xbf16>, vector<128x128xbf16>, vector<16x128xf32> -> vector<16x128xf32>
    %c2 = arith.constant 2 : index
    %c0_14 = arith.constant 0 : index
    %20 = vector.load %arg6[%c2, %c0_14] : memref<4x128xf32, #tpu.memory_space<vmem>>, vector<1x128xf32>
    %21 = vector.broadcast %20 : vector<1x128xf32> to vector<16x128xf32>
    %22 = arith.addf %19, %21 : vector<16x128xf32>
    %cst_15 = arith.constant 0.000000e+00 : f32
    %23 = vector.broadcast %cst_15 : f32 to vector<16x128xf32>
    %24 = arith.maximumf %22, %23 : vector<16x128xf32>
    %25 = arith.truncf %24 : vector<16x128xf32> to vector<16x128xbf16>
    %c0_16 = arith.constant 0 : index
    %c0_17 = arith.constant 0 : index
    %26 = vector.load %arg5[%c0_16, %c0_17] : memref<128x128xbf16, #tpu.memory_space<vmem>>, vector<128x128xbf16>
    %cst_18 = arith.constant dense<0.000000e+00> : vector<16x128xf32>
    %27 = tpu.matmul %25, %26, %cst_18 {dimension_numbers = #tpu.dot_dimension_numbers<[1], [0], [0], [1], [0, 0, 1, 1], [], []>} : vector<16x128xbf16>, vector<128x128xbf16>, vector<16x128xf32> -> vector<16x128xf32>
    %c3 = arith.constant 3 : index
    %c0_19 = arith.constant 0 : index
    %28 = vector.load %arg6[%c3, %c0_19] : memref<4x128xf32, #tpu.memory_space<vmem>>, vector<1x128xf32>
    %29 = vector.broadcast %28 : vector<1x128xf32> to vector<16x128xf32>
    %30 = arith.addf %27, %29 : vector<16x128xf32>
    %c0_20 = arith.constant 0 : index
    %c0_21 = arith.constant 0 : index
    %31 = vector.load %arg7[%c0_20, %c0_21] : memref<16x128xf32, #tpu.memory_space<vmem>>, vector<16x128xf32>
    tpu.vector_store %arg7[%c0_20, %c0_21], %30 {strides = array<i32>} : memref<16x128xf32, #tpu.memory_space<vmem>>, vector<16x128xf32>,
    return
  }
  func.func @transform_0(%arg0: i32) -> (i32, i32) {
    %c0_i32 = arith.constant 0 : i32
    %c0_i32_0 = arith.constant 0 : i32
    return %arg0, %c0_i32 : i32, i32
  }
  func.func @transform_1(%arg0: i32) -> (i32, i32) {
    %c0_i32 = arith.constant 0 : i32
    %c0_i32_0 = arith.constant 0 : i32
    %c0_i32_1 = arith.constant 0 : i32
    return %c0_i32, %c0_i32_0 : i32, i32
  }
  func.func @transform_2(%arg0: i32) -> (i32, i32) {
    %c0_i32 = arith.constant 0 : i32
    %c0_i32_0 = arith.constant 0 : i32
    %c0_i32_1 = arith.constant 0 : i32
    return %c0_i32, %c0_i32_0 : i32, i32
  }
  func.func @transform_3(%arg0: i32) -> (i32, i32) {
    %c0_i32 = arith.constant 0 : i32
    %c0_i32_0 = arith.constant 0 : i32
    %c0_i32_1 = arith.constant 0 : i32
    return %c0_i32, %c0_i32_0 : i32, i32
  }
  func.func @transform_4(%arg0: i32) -> (i32, i32) {
    %c0_i32 = arith.constant 0 : i32
    %c0_i32_0 = arith.constant 0 : i32
    %c0_i32_1 = arith.constant 0 : i32
    return %c0_i32, %c0_i32_0 : i32, i32
  }
  func.func @transform_5(%arg0: i32) -> (i32, i32) {
    %c0_i32 = arith.constant 0 : i32
    %c0_i32_0 = arith.constant 0 : i32
    %c0_i32_1 = arith.constant 0 : i32
    return %c0_i32, %c0_i32_0 : i32, i32
  }
  func.func @transform_6(%arg0: i32) -> (i32, i32) {
    %c0_i32 = arith.constant 0 : i32
    %c0_i32_0 = arith.constant 0 : i32
    return %arg0, %c0_i32 : i32, i32
  }
}

</mosaic_0001>

<bundles_post_ra>
// kernel: fcn_forward.1
= control target key start
LH: loop header
LB: loop body
LE: loop exit
PB: predicated region body
PF: predicated region fallthrough
CT: control target
= control target key end

     0   :  { %v1307_v43 = vmov 0.0   ;;  %vm1308_vm0 = vmmov 0   ;;  %vm443_vm1 = vcmask 130048   ;;  %s1656_s0 = inlined_call_operand.vmem [shape: f32[16,784], index: 0, kind: input, shape index: {}]   ;;  %s1657_s1 = inlined_call_operand.vmem [shape: bf16[784,128], index: 1, kind: input, shape index: {}]   ;;  %s1658_s2 = inlined_call_operand.vmem [shape: bf16[128,128], index: 2, kind: input, shape index: {}]   ;;  %s1659_s3 = inlined_call_operand.vmem [shape: bf16[128,128], index: 3, kind: input, shape index: {}]   ;;  %s1660_s4 = inlined_call_operand.vmem [shape: bf16[128,128], index: 4, kind: input, shape index: {}]   ;;  %s1661_s5 = inlined_call_operand.vmem [shape: f32[4,128], index: 5, kind: input, shape index: {}]   ;;  %s1662_s6 = inlined_call_operand.hbm [shape: f32[16,128], index: 6, kind: output, shape index: {}]  }
   0x1   :  { %v1212_v0 = vld [vmem:[%s1657_s1 + $0x78] sm:$0xff]   ;;  %v1216_v4 = vld [vmem:[%s1657_s1 + $0x70] sm:$0xff]   ;;  %v1220_v8 = vld [vmem:[%s1657_s1 + $0x68] sm:$0xff]  }
   0x2   :  { %v1213_v1 = vld [vmem:[%s1657_s1 + $0x38] sm:$0xff]   ;;  %1046 = vmatprep.subr.bf16.mxu0 %v1212_v0  ;;  %v1217_v5 = vld [vmem:[%s1657_s1 + $0x30] sm:$0xff]   ;;  %v1221_v9 = vld [vmem:[%s1657_s1 + $0x28] sm:$0xff]  }
   0x3   :  { %v1214_v2 = vld [vmem:[%s1657_s1 + $0xf8] sm:$0xff]   ;;  %1047 = vmatpush3.bf16.msra.mxu0 %v1213_v1  ;;  %v1218_v6 = vld [vmem:[%s1657_s1 + $0xf0] sm:$0xff]   ;;  %v1222_v10 = vld [vmem:[%s1657_s1 + $0xe8] sm:$0xff]  }
   0x4   :  { %v1215_v3 = vld [vmem:[%s1657_s1 + $0xb8] sm:$0xff]   ;;  %1068 = vmatprep.subr.bf16.mxu1 %v1214_v2  ;;  %1048 = vmatprep.subr.bf16.mxu0 %v1216_v4  ;;  %v1219_v7 = vld [vmem:[%s1657_s1 + $0xb0] sm:$0xff]   ;;  %v1223_v11 = vld [vmem:[%s1657_s1 + $0xa8] sm:$0xff]  }
   0x5   :  { %1069 = vmatpush3.bf16.msra.mxu1 %v1215_v3  ;;  %v1224_v12 = vld [vmem:[%s1657_s1 + $0x60] sm:$0xff]   ;;  %v1228_v16 = vld [vmem:[%s1657_s1 + $0x58] sm:$0xff]   ;;  %v1232_v20 = vld [vmem:[%s1657_s1 + $0x50] sm:$0xff]  }
   0x6   :  { %1070 = vmatprep.subr.bf16.mxu1 %v1218_v6  ;;  %v1225_v13 = vld [vmem:[%s1657_s1 + $0x20] sm:$0xff]   ;;  %v1229_v17 = vld [vmem:[%s1657_s1 + $0x18] sm:$0xff]   ;;  %v1233_v21 = vld [vmem:[%s1657_s1 + $0x10] sm:$0xff]  }
   0x7   :  { %1049 = vmatpush3.bf16.msra.mxu0 %v1217_v5  ;;  %v1226_v14 = vld [vmem:[%s1657_s1 + $0xe0] sm:$0xff]   ;;  %v1230_v18 = vld [vmem:[%s1657_s1 + $0xd8] sm:$0xff]   ;;  %v1234_v22 = vld [vmem:[%s1657_s1 + $0xd0] sm:$0xff]  }
   0x8   :  { %1050 = vmatprep.subr.bf16.mxu0 %v1220_v8  ;;  %v1227_v15 = vld [vmem:[%s1657_s1 + $0xa0] sm:$0xff]   ;;  %v1231_v19 = vld [vmem:[%s1657_s1 + $0x98] sm:$0xff]   ;;  %v1235_v23 = vld [vmem:[%s1657_s1 + $0x90] sm:$0xff]  }
   0x9   :  { %1071 = vmatpush3.bf16.msra.mxu1 %v1219_v7  ;;  %v1236_v24 = vld [vmem:[%s1657_s1 + $0x48] sm:$0xff]   ;;  %v1240_v28 = vld [vmem:[%s1657_s1 + $0x40] sm:$0xff]   ;;  %v32_v36 = vld [vmem:[%s1656_s0 + $0x38] sm:$0xff] }
   0xa   :  { %1072 = vmatprep.subr.bf16.mxu1 %v1222_v10  ;;  %v1237_v25 = vld [vmem:[%s1657_s1 + $0x8] sm:$0xff]   ;;  %v1241_v29 = vld [vmem:[%s1657_s1] sm:$0xff]   ;;  %v1244_v38 = vld [vmem:[%s1657_s1 + $0x178] sm:$0xff]  }
   0xb   :  { %1051 = vmatpush3.bf16.msra.mxu0 %v1221_v9  ;;  %v1238_v26 = vld [vmem:[%s1657_s1 + $0xc8] sm:$0xff]   ;;  %v1242_v30 = vld [vmem:[%s1657_s1 + $0xc0] sm:$0xff]   ;;  %v28_v39 = vld [vmem:[%s1656_s0 + $0x18] sm:$0xff] }
   0xc   :  { %1052 = vmatprep.subr.bf16.mxu0 %v1224_v12  ;;  %v1239_v27 = vld [vmem:[%s1657_s1 + $0x88] sm:$0xff]   ;;  %v33_v32 = vld [vmem:[%s1656_s0 + $0x40] sm:$0xff]  ;;  %v35_v40 = vld [vmem:[%s1656_s0 + $0x50] sm:$0xff] }
   0xd   :  { %1073 = vmatpush3.bf16.msra.mxu1 %v1223_v11  ;;  %v26_v31 = vld [vmem:[%s1656_s0 + $0x8] sm:$0xff]  ;;  %v1243_v34 = vld [vmem:[%s1657_s1 + $0x80] sm:$0xff]   ;;  %v42_v41 = vpack.c.bf16 %v35_v40, %v28_v39  ;;  %v1245_v42 = vld [vmem:[%s1657_s1 + $0x138] sm:$0xff]  }
   0xe   :  { %1074 = vmatprep.subr.bf16.mxu1 %v1226_v14  ;;  %v40_v33 = vpack.c.bf16 %v33_v32, %v26_v31  ;;  %v25_v35 = vld [vmem:[%s1656_s0] sm:$0xff]  ;;  %v27_v44 = vld [vmem:[%s1656_s0 + $0x10] sm:$0xff]  ;;  %v34_v45 = vld [vmem:[%s1656_s0 + $0x48] sm:$0xff] }
   0xf   :  { %1053 = vmatpush3.bf16.msra.mxu0 %v1225_v13  ;;  %v39_v37 = vpack.c.bf16 %v32_v36, %v25_v35  ;;  %520 = vmatprep.mubr.bf16.mxu1 %v42_v41  ;;  %v41_v46 = vpack.c.bf16 %v34_v45, %v27_v44  ;;  %v1246_v47 = vld [vmem:[%s1657_s1 + $0x170] sm:$0xff]   ;;  %v1248_v49 = vld [vmem:[%s1657_s1 + $0x168] sm:$0xff]   ;;  %v1250_v51 = vld [vmem:[%s1657_s1 + $0x160] sm:$0xff]  }
  0x10   :  { %1054 = vmatprep.subr.bf16.mxu0 %v1228_v16  ;;  %479 = vmatprep.mubr.bf16.mxu0 %v40_v33  ;;  %v1247_v48 = vld [vmem:[%s1657_s1 + $0x130] sm:$0xff]   ;;  %v1249_v50 = vld [vmem:[%s1657_s1 + $0x128] sm:$0xff]   ;;  %v1251_v52 = vld [vmem:[%s1657_s1 + $0x120] sm:$0xff]  }
  0x11   :  { %1075 = vmatpush3.bf16.msra.mxu1 %v1227_v15  ;;  %v1252_v53 = vld [vmem:[%s1657_s1 + $0x158] sm:$0xff]   ;;  %v1254_v55 = vld [vmem:[%s1657_s1 + $0x150] sm:$0xff]   ;;  %v1260_v56 = vld [vmem:[%s1657_s1 + $0x180] sm:$0xff]  }
  0x12   :  { %1076 = vmatprep.subr.bf16.mxu1 %v1230_v18  ;;  %v1253_v54 = vld [vmem:[%s1657_s1 + $0x118] sm:$0xff]   ;;  %v30_v57 = vld [vmem:[%s1656_s0 + $0x28] sm:$0xff]  ;;  %v1255_v58 = vld [vmem:[%s1657_s1 + $0x110] sm:$0xff]  }
  0x13   :  { %1055 = vmatpush3.bf16.msra.mxu0 %v1229_v17  ;;  %v1256_v59 = vld [vmem:[%s1657_s1 + $0x148] sm:$0xff]   ;;  %v37_v60 = vld [vmem:[%s1656_s0 + $0x60] sm:$0xff]  ;;  %v31_v62 = vld [vmem:[%s1656_s0 + $0x30] sm:$0xff] }
  0x14   :  { %1056 = vmatprep.subr.bf16.mxu0 %v1232_v20  ;;  %v44_v61 = vpack.c.bf16 %v37_v60, %v30_v57  ;;  %v38_v63 = vld [vmem:[%s1656_s0 + $0x68] sm:$0xff]  ;;  %v1258_v2 = vld [vmem:[%s1657_s1 + $0x140] sm:$0xff]   ;;  %v36_v5 = vld [vmem:[%s1656_s0 + $0x58] sm:$0xff] }
  0x15   :  { %1077 = vmatpush3.bf16.msra.mxu1 %v1231_v19  ;;  %v45_v0 = vpack.c.bf16 %v38_v63, %v31_v62  ;;  %v1257_v1 = vld [vmem:[%s1657_s1 + $0x108] sm:$0xff]   ;;  %v1259_v3 = vld [vmem:[%s1657_s1 + $0x100] sm:$0xff]  }
  0x16   :  { %1078 = vmatprep.subr.bf16.mxu1 %v1234_v22  ;;  %v29_v4 = vld [vmem:[%s1656_s0 + $0x20] sm:$0xff] }
  0x17   :  { %1057 = vmatpush3.bf16.msra.mxu0 %v1233_v21  ;;  %v43_v6 = vpack.c.bf16 %v36_v5, %v29_v4 }
  0x18   :  { %1058 = vmatprep.subr.bf16.mxu0 %v1236_v24 }
  0x19   :  { %1079 = vmatpush3.bf16.msra.mxu1 %v1235_v23 }
  0x1a   :  { %1080 = vmatprep.subr.bf16.mxu1 %v1238_v26 }
  0x1b   :  { %1059 = vmatpush3.bf16.msra.mxu0 %v1237_v25 }
  0x1c   :  { %1060 = vmatprep.subr.bf16.mxu0 %v1240_v28 }
  0x1d   :  { %1081 = vmatpush3.bf16.msra.mxu1 %v1239_v27 }
  0x1e   :  { %1082 = vmatprep.subr.bf16.mxu1 %v1242_v30 }
  0x1f   :  { %1061 = vmatpush3.bf16.msra.mxu0 %v1241_v29 }
  0x20   :  { %1090 = vmatprep.subr.bf16.mxu0 %v1244_v38 }
  0x21   :  { %1083 = vmatpush3.bf16.msra.mxu1 %v1243_v34 }
  0x22   :  { %1141 = vmatprep.subr.bf16.mxu1 %v1307_v43  ;;  %480 = vmatmul.mubr.bf16.vlgmr.msra.gmra.mxu0 %v39_v37 }
  0x23   :  { %1091 = vmatpush3.bf16.msra.mxu0 %v1245_v42  ;;  %561 = vmatprep.mubr.bf16.mxu0 %v44_v61 }
  0x24   :  { %521 = vmatmul.mubr.bf16.vlgmr.msra.gmra.mxu1 %v41_v46  ;;  %1092 = vmatprep.subr.bf16.mxu0 %v1246_v47 }
  0x25   :  { %1143 = vmatprep.mubr.msk.bf16.mxu1 %vm1308_vm0, %v1307_v43  ;;  %1142 = vmatpush3.bf16.msra.mxu1 %v1260_v56 }
  0x26   :  { %1147 = vmatprep.subr.bf16.mxu1 %v1307_v43 }
  0x27   :  { %1093 = vmatpush3.bf16.msra.mxu0 %v1247_v48 }
  0x28   :  { %1094 = vmatprep.subr.bf16.mxu0 %v1248_v49 }
  0x2b   :  { %1095 = vmatpush3.bf16.msra.mxu0 %v1249_v50 }
  0x2c   :  { %1096 = vmatprep.subr.bf16.mxu0 %v1250_v51  ;;  %1144 = vmatmul.mubr.msk.bf16.vlgmr.msra.gmra.mxu1 %vm443_vm1, %v45_v0 }
  0x2d   :  { %1163 = vmatprep.mubr.msk.bf16.mxu1 %vm1308_vm0, %v1307_v43 }
  0x2f   :  { %1097 = vmatpush3.bf16.msra.mxu0 %v1251_v52 }
  0x30   :  { %1098 = vmatprep.subr.bf16.mxu0 %v1252_v53 }
  0x33   :  { %1099 = vmatpush3.bf16.msra.mxu0 %v1253_v54 }
  0x34   :  { %1100 = vmatprep.subr.bf16.mxu0 %v1254_v55 }
  0x37   :  { %1101 = vmatpush3.bf16.msra.mxu0 %v1255_v58 }
  0x38   :  { %1102 = vmatprep.subr.bf16.mxu0 %v1256_v59 }
  0x3b   :  { %1103 = vmatpush3.bf16.msra.mxu0 %v1257_v1 }
  0x3c   :  { %1104 = vmatprep.subr.bf16.mxu0 %v1258_v2 }
  0x3f   :  { %1105 = vmatpush3.bf16.msra.mxu0 %v1259_v3 }
  0x40   :  { %1167 = vmatprep.subr.bf16.mxu0 %v1307_v43 }
  0x42   :  { %562 = vmatmul.mubr.bf16.vlgmr.msra.gmra.mxu0 %v43_v6 }
  0x43   :  { %1183 = vmatprep.mubr.msk.bf16.mxu0 %vm1308_vm0, %v1307_v43 }
  0x44   :  { %11 = vsyncpa [#allocation3], 0  ;;  %v1261_v7 = vld [vmem:[%s1658_s2 + $0x38] sm:$0xff]   ;;  %v1262_v8 = vld [vmem:[%s1658_s2 + $0x30] sm:$0xff]  }
  0x45   :  { %1148 = vmatpush3.bf16.msra.mxu1 %v1261_v7  ;;  %v1263_v9 = vld [vmem:[%s1658_s2 + $0x28] sm:$0xff]   ;;  %v1264_v10 = vld [vmem:[%s1658_s2 + $0x20] sm:$0xff]   ;;  %v1265_v11 = vld [vmem:[%s1658_s2 + $0x18] sm:$0xff]  }
  0x46   :  { %1149 = vmatprep.subr.bf16.mxu1 %v1307_v43  ;;  %v1266_v12 = vld [vmem:[%s1658_s2 + $0x10] sm:$0xff]   ;;  %v1267_v13 = vld [vmem:[%s1658_s2 + $0x8] sm:$0xff]   ;;  %v1268_v14 = vld [vmem:[%s1658_s2] sm:$0xff]  }
  0x47   :  { %v1269_v15 = vld [vmem:[%s1659_s3 + $0x38] sm:$0xff]   ;;  %v1270_v16 = vld [vmem:[%s1659_s3 + $0x30] sm:$0xff]   ;;  %v1271_v17 = vld [vmem:[%s1659_s3 + $0x28] sm:$0xff]  }
  0x48   :  { %1168 = vmatpush3.bf16.msra.mxu0 %v1269_v15  ;;  %v1272_v18 = vld [vmem:[%s1659_s3 + $0x20] sm:$0xff]   ;;  %v1273_v19 = vld [vmem:[%s1659_s3 + $0x18] sm:$0xff]   ;;  %v1274_v55 = vld [vmem:[%s1659_s3 + $0x10] sm:$0xff]  }
  0x49   :  { %1150 = vmatpush3.bf16.msra.mxu1 %v1262_v8  ;;  %1169 = vmatprep.subr.bf16.mxu0 %v1307_v43  ;;  %v968_v32 = vld [vmem:[%s1661_s5] ss:$0 sm:$0xff]  ;;  %v1275_v56 = vld [vmem:[%s1659_s3 + $0x8] sm:$0xff]   ;;  %v1277_v58 = vld [vmem:[%s1660_s4 + $0x38] sm:$0xff]  }
  0x4a   :  { %1151 = vmatprep.subr.bf16.mxu1 %v1307_v43  ;;  %v1276_v57 = vld [vmem:[%s1659_s3] sm:$0xff]   ;;  %v1278_v59 = vld [vmem:[%s1660_s4 + $0x30] sm:$0xff]   ;;  %v1279_v60 = vld [vmem:[%s1660_s4 + $0x28] sm:$0xff]  }
  0x4b   :  { %v1280_v61 = vld [vmem:[%s1660_s4 + $0x20] sm:$0xff]   ;;  %v1281_v62 = vld [vmem:[%s1660_s4 + $0x18] sm:$0xff]  }
  0x4c   :  { %1170 = vmatpush3.bf16.msra.mxu0 %v1270_v16  ;;  %v1019_v63 = vld [vmem:[%s1661_s5 + $0x1] ss:$0 sm:$0xff] }
  0x4d   :  { %1152 = vmatpush3.bf16.msra.mxu1 %v1263_v9  ;;  %1171 = vmatprep.subr.bf16.mxu0 %v1307_v43  ;;  %v1282_v9 = vld [vmem:[%s1660_s4 + $0x10] sm:$0xff]  }
  0x4e   :  { %1153 = vmatprep.subr.bf16.mxu1 %v1307_v43 }
  0x50   :  { %1172 = vmatpush3.bf16.msra.mxu0 %v1271_v17 }
  0x51   :  { %1154 = vmatpush3.bf16.msra.mxu1 %v1264_v10  ;;  %1173 = vmatprep.subr.bf16.mxu0 %v1307_v43  ;;  %v1283_v10 = vld [vmem:[%s1660_s4 + $0x8] sm:$0xff]  }
  0x52   :  { %1155 = vmatprep.subr.bf16.mxu1 %v1307_v43 }
  0x54   :  { %1174 = vmatpush3.bf16.msra.mxu0 %v1272_v18 }
  0x55   :  { %1156 = vmatpush3.bf16.msra.mxu1 %v1265_v11  ;;  %1175 = vmatprep.subr.bf16.mxu0 %v1307_v43  ;;  %v1284_v11 = vld [vmem:[%s1660_s4] sm:$0xff]   ;;  %s1309_s4 = smov [#allocation2]  }
  0x56   :  { %1157 = vmatprep.subr.bf16.mxu1 %v1307_v43  ;;  %s957_s27 = sshll.u32 %s1309_s4, 4  ;;  %s958_s27 = int_to_ptr.vmem [resolvable:$true] %s957_s27 }
  0x57   :  { %s1285_s28 = scalar_lea.vmem %s958_s27, 256  ;;  %p1290_p1 = scmp.lt.s32.totalorder %s958_s27, %s958_s27 }
  0x58   :  { %1176 = vmatpush3.bf16.msra.mxu0 %v1273_v19  ;;  %p1286_p0 = scmp.ne.s32.totalorder %s958_s27, %s1285_s28  ;;  %p1291_p2 = scmp.lt.s32.totalorder %s1285_s28, %s1285_s28 }
  0x59   :  { %1158 = vmatpush3.bf16.msra.mxu1 %v1266_v12  ;;  %1177 = vmatprep.subr.bf16.mxu0 %v1307_v43  ;;  %v1028_v12 = vld [vmem:[%s1661_s5 + $0x2] ss:$0 sm:$0xff] }
  0x5a   :  { %1159 = vmatprep.subr.bf16.mxu1 %v1307_v43  ;;  %p1292_p3 = por %p1291_p2, %p1290_p1 }
  0x5c   :  { %1178 = vmatpush3.bf16.msra.mxu0 %v1274_v55  ;;  %p1293_p4 = pnand %p1292_p3, %p1286_p0 }
  0x5d   :  { %1160 = vmatpush3.bf16.msra.mxu1 %v1267_v13  ;;  %1179 = vmatprep.subr.bf16.mxu0 %v1307_v43 }
  0x5e   :  { %1161 = vmatprep.subr.bf16.mxu1 %v1307_v43 }
  0x60   :  { %1180 = vmatpush3.bf16.msra.mxu0 %v1275_v56 }
  0x61   :  { %1162 = vmatpush3.bf16.msra.mxu1 %v1268_v14  ;;  %1181 = vmatprep.subr.bf16.mxu0 %v1307_v43 }
  0x62   :  { %1187 = vmatprep.subr.bf16.mxu1 %v1307_v43 }
  0x64   :  { %1182 = vmatpush3.bf16.msra.mxu0 %v1276_v57 }
  0xe2   :  { %v1062_v23 = vpop.f32.mrf.mxu0 }
  0xe4   :  { %v1084_v20 = vpop.f32.mrf.mxu1  ;;  %v1063_v25 = vpop.f32.mrf.mxu0 }
  0xe5   :  { %v1064_v31 = vadd.f32 %v1063_v25, %v1062_v23 }
  0xe6   :  { %v1085_v21 = vpop.f32.mrf.mxu1  ;;  %v1065_v28 = vpop.f32.mrf.mxu0 }
  0xe7   :  { %v482_v34 = vadd.f32 %v1064_v31, %v968_v32  ;;  %v1086_v35 = vadd.f32 %v1085_v21, %v1084_v20 }
  0xe8   :  { %v1087_v22 = vpop.f32.mrf.mxu1  ;;  %v1066_v33 = vpop.f32.mrf.mxu0 }
  0xe9   :  { %v1067_v36 = vadd.f32 %v1066_v33, %v1065_v28  ;;  %v523_v39 = vadd.f32 %v1086_v35, %v482_v34 }
  0xea   :  { %v1088_v24 = vpop.f32.mrf.mxu1 }
  0xeb   :  { %v485_v40 = vadd.f32 %v1067_v36, %v968_v32  ;;  %v1089_v41 = vadd.f32 %v1088_v24, %v1087_v22 }
  0xec   :  { %v604_v26 = vpop.f32.mrf.mxu1 }
  0xed   :  { %v526_v47 = vadd.f32 %v1089_v41, %v485_v40 }
  0xee   :  { %v1145_v27 = vpop.f32.mrf.mxu1 }
  0xf0   :  { %v607_v29 = vpop.f32.mrf.mxu1 }
  0xf2   :  { %v1146_v30 = vpop.f32.mrf.mxu1 }
 0x102   :  { %v1106_v37 = vpop.f32.mrf.mxu0 }
 0x104   :  { %v1107_v38 = vpop.f32.mrf.mxu0 }
 0x105   :  { %v1108_v42 = vadd.f32 %v1107_v38, %v1106_v37 }
 0x106   :  { %v1109_v44 = vpop.f32.mrf.mxu0 }
 0x107   :  { %v564_v45 = vadd.f32 %v1108_v42, %v523_v39 }
 0x108   :  { %v1110_v46 = vpop.f32.mrf.mxu0 }
 0x109   :  { %v1111_v48 = vadd.f32 %v1110_v46, %v1109_v44  ;;  %v605_v49 = vadd.f32 %v604_v26, %v564_v45 }
 0x10b   :  { %v567_v50 = vadd.f32 %v1111_v48, %v526_v47  ;;  %v611_v52 = vmax.f32 %v605_v49, 0.0 }
 0x10d   :  { %v608_v51 = vadd.f32 %v607_v29, %v567_v50 }
 0x10f   :  { %v612_v53 = vmax.f32 %v608_v51, 0.0 }
 0x111   :  { %v613_v54 = vpack.c.bf16 %v612_v53, %v611_v52 }
 0x113   :  { %1164 = vmatmul.mubr.bf16.vlgmr.msra.gmra.mxu1 %v613_v54 }
 0x114   :  { %1203 = vmatprep.mubr.msk.bf16.mxu1 %vm1308_vm0, %v1307_v43  ;;  %1188 = vmatpush3.bf16.msra.mxu1 %v1277_v58 }
 0x115   :  { %1189 = vmatprep.subr.bf16.mxu1 %v1307_v43 }
 0x118   :  { %1190 = vmatpush3.bf16.msra.mxu1 %v1278_v59 }
 0x119   :  { %1191 = vmatprep.subr.bf16.mxu1 %v1307_v43 }
 0x11c   :  { %1192 = vmatpush3.bf16.msra.mxu1 %v1279_v60 }
 0x11d   :  { %1193 = vmatprep.subr.bf16.mxu1 %v1307_v43 }
 0x120   :  { %1194 = vmatpush3.bf16.msra.mxu1 %v1280_v61 }
 0x121   :  { %1195 = vmatprep.subr.bf16.mxu1 %v1307_v43 }
 0x124   :  { %1196 = vmatpush3.bf16.msra.mxu1 %v1281_v62 }
 0x125   :  { %1197 = vmatprep.subr.bf16.mxu1 %v1307_v43 }
 0x128   :  { %1198 = vmatpush3.bf16.msra.mxu1 %v1282_v9 }
 0x129   :  { %1199 = vmatprep.subr.bf16.mxu1 %v1307_v43 }
 0x12c   :  { %1200 = vmatpush3.bf16.msra.mxu1 %v1283_v10 }
 0x12d   :  { %1201 = vmatprep.subr.bf16.mxu1 %v1307_v43  ;;  %v1037_v43 = vld [vmem:[%s1661_s5 + $0x3] ss:$0 sm:$0xff] }
 0x130   :  { %1202 = vmatpush3.bf16.msra.mxu1 %v1284_v11 }
 0x1d3   :  { %v717_v0 = vpop.f32.mrf.mxu1 }
 0x1d4   :  { %v718_v2 = vadd.f32 %v1019_v63, %v717_v0 }
 0x1d5   :  { %v1165_v1 = vpop.f32.mrf.mxu1 }
 0x1d6   :  { %v724_v6 = vmax.f32 %v718_v2, 0.0 }
 0x1d7   :  { %v720_v3 = vpop.f32.mrf.mxu1 }
 0x1d8   :  { %v721_v4 = vadd.f32 %v1019_v63, %v720_v3 }
 0x1d9   :  { %v1166_v5 = vpop.f32.mrf.mxu1 }
 0x1da   :  { %v725_v7 = vmax.f32 %v721_v4, 0.0 }
 0x1dc   :  { %v726_v8 = vpack.c.bf16 %v725_v7, %v724_v6 }
 0x1de   :  { %1184 = vmatmul.mubr.bf16.vlgmr.msra.gmra.mxu0 %v726_v8 }
 0x29e   :  { %v830_v13 = vpop.f32.mrf.mxu0 }
 0x29f   :  { %v831_v15 = vadd.f32 %v1028_v12, %v830_v13 }
 0x2a0   :  { %v1185_v14 = vpop.f32.mrf.mxu0 }
 0x2a1   :  { %v837_v19 = vmax.f32 %v831_v15, 0.0 }
 0x2a2   :  { %v833_v16 = vpop.f32.mrf.mxu0 }
 0x2a3   :  { %v834_v17 = vadd.f32 %v1028_v12, %v833_v16 }
 0x2a4   :  { %v1186_v18 = vpop.f32.mrf.mxu0 }
 0x2a5   :  { %v838_v20 = vmax.f32 %v834_v17, 0.0 }
 0x2a7   :  { %v839_v21 = vpack.c.bf16 %v838_v20, %v837_v19 }
 0x2a9   :  { %1204 = vmatmul.mubr.bf16.vlgmr.msra.gmra.mxu1 %v839_v21 }
 0x369   :  { %v943_v22 = vpop.f32.mrf.mxu1 }
 0x36a   :  { %v944_v23 = vadd.f32 %v1037_v43, %v943_v22 }
 0x36b   :  { %v1205_v24 = vpop.f32.mrf.mxu1 }
 0x36c   :  { %950 = vst [vmem:[#allocation2] sm:$0xff] %v944_v23 }
 0x36d   :  { %v946_v25 = vpop.f32.mrf.mxu1 }
 0x36e   :  { %v947_v26 = vadd.f32 %v1037_v43, %v946_v25 }
 0x36f   :  { %v1206_v27 = vpop.f32.mrf.mxu1 }
 0x370   :  { %951 = vst [vmem:[#allocation2 + $0x8] sm:$0xff] %v947_v26 }
 0x371   :  { %1296 = shalt.err (!%p1293_p4)
}
 0x372   :  { %s1310_s29 = smov 128   ;;  %s1311_s5 = smov 8  }
 0x373   :  { %963 = dma.vmem_to_hbm [thread:$0]  %s958_s27, 256, %s1662_s6, [#allocation3], %s1310_s29, %s1310_s29, %s1311_s5  }
 0x374   :  { %1305 = dma.done.wait [#allocation3], 256  }
 0x375   :  { %1306 = vsyncadd [#allocation3], 4294967040 }
 0x376   :  { %967 = vsyncpa [#allocation3], 1 }

</bundles_post_ra>
